<compile_context>
chip_gen: v6e
topology: v6e:2x2x1
jax: 0.10.0
libtpu: 0.0.40
codegen_flags: <defaults>
</compile_context>

<pallas_src>
import math

import jax
import jax.numpy as jnp
from jax import lax
from jax.experimental import pallas as pl
from jax.experimental.pallas import tpu as pltpu


# ----------------------------------------------------------------------------
# Kernel: one (batch, head) tile per grid step.
# ----------------------------------------------------------------------------
def _mha_kernel(x_ref, wq_ref, wk_ref, wp_ref, b_ref, o_ref):
    T, E = x_ref.shape
    h = pl.program_id(1)

    # bf16 MXU operands, f32 accumulation.
    x_bf = x_ref[...].astype(jnp.bfloat16)                          # (T, E)

    # Per-head Q/K projections (1/sqrt(Dh) scale is folded into Wq at init).
    q = jnp.dot(x_bf, wq_ref[0], preferred_element_type=jnp.float32)  # (T, Dh)
    k = jnp.dot(x_bf, wk_ref[0], preferred_element_type=jnp.float32)  # (T, Dh)
    # Reference quirk reproduced: V = self.key(x)  =>  V == K.
    k_bf = k.astype(jnp.bfloat16)

    # Scores: q @ k^T (contract over Dh), bf16 operands, f32 result.
    s = lax.dot_general(q.astype(jnp.bfloat16), k_bf,
                        dimension_numbers=(((1,), (1,)), ((), ())),
                        preferred_element_type=jnp.float32)          # (T, T)

    # Causal mask from iota (no persistent (T,T) bool); large-negative instead
    # of -inf -> exp underflows to exactly 0, and is NaN-safe if padding masks
    # are added later.
    row = lax.broadcasted_iota(jnp.int32, (T, T), 0)
    col = lax.broadcasted_iota(jnp.int32, (T, T), 1)
    s = jnp.where(col <= row, s, jnp.float32(-1e30))

    # Numerically stable softmax, strictly f32, exact division.
    m = jnp.max(s, axis=-1, keepdims=True)
    e = jnp.exp(s - m)
    p = e / jnp.sum(e, axis=-1, keepdims=True)
    # TODO(synk): attention dropout (p=0.2) skipped -- eval-mode identity.

    # attn @ V (V == K), then this head's slice of the output projection.
    ho = jnp.dot(p.astype(jnp.bfloat16), k_bf,
                 preferred_element_type=jnp.float32)                 # (T, Dh)
    contrib = jnp.dot(ho.astype(jnp.bfloat16), wp_ref[0],
                      preferred_element_type=jnp.float32)            # (T, E)

    # Accumulate the projection across the h grid axis directly in the
    # resident f32 output block: out = bias + sum_h head_h @ Wp_h.
    @pl.when(h == 0)
    def _():
        o_ref[...] = jnp.broadcast_to(b_ref[...], o_ref.shape)

    o_ref[...] += contrib
    # TODO(synk): output dropout (p=0.2) skipped -- eval-mode identity.


# ----------------------------------------------------------------------------
# One-time weight packing (call at init, NOT inside the jitted forward).
# ----------------------------------------------------------------------------
def pack_params(wq, wk, w_proj, b_proj, *, dtype=jnp.bfloat16):
    """wq, wk: (H, E, Dh) per-head (x @ W) weights.
       w_proj: torch-layout (E, H*Dh); b_proj: (E,)."""
    H, E, Dh = wq.shape
    scale = 1.0 / math.sqrt(Dh)
    wq_p = (wq * scale).astype(dtype)                       # scale folded in
    wk_p = wk.astype(dtype)
    # (E, H*Dh) -> (H*Dh, E) -> per-head (H, Dh, E): kernel does plain y @ w.
    wp_p = jnp.transpose(w_proj, (1, 0)).reshape(H, Dh, E).astype(dtype)
    b_p = b_proj.reshape(1, E).astype(jnp.float32)
    return wq_p, wk_p, wp_p, b_p


# ----------------------------------------------------------------------------
# Jitted forward
# ----------------------------------------------------------------------------
@jax.jit
def mha_forward(x, wq_p, wk_p, wp_p, b_p):
    """x: (B, T, E); packed weights from pack_params."""
    B, T, E = x.shape
    H, _, Dh = wq_p.shape
    x2 = x.reshape(B * T, E)                                # 2-D end-to-end

    out2 = pl.pallas_call(
        _mha_kernel,
        out_shape=jax.ShapeDtypeStruct((B * T, E), jnp.float32),
        grid=(B, H),                                        # reduction (h) last
        in_specs=[
            pl.BlockSpec((T, E), lambda b, h: (b, 0)),       # x rows for batch b
            pl.BlockSpec((1, E, Dh), lambda b, h: (h, 0, 0)),  # Wq head h
            pl.BlockSpec((1, E, Dh), lambda b, h: (h, 0, 0)),  # Wk head h
            pl.BlockSpec((1, Dh, E), lambda b, h: (h, 0, 0)),  # Wp slice head h
            pl.BlockSpec((1, E), lambda b, h: (0, 0)),         # bias
        ],
        out_specs=pl.BlockSpec((T, E), lambda b, h: (b, 0)),   # resident over h
        compiler_params=pltpu.CompilerParams(
            dimension_semantics=("parallel", "arbitrary")),
    )(x2, wq_p, wk_p, wp_p, b_p)

    return out2.reshape(B, T, E)


# ----------------------------------------------------------------------------
# Pure-JAX f32 reference (mirrors the PyTorch module, eval mode)
# ----------------------------------------------------------------------------
def _reference(x, wq, wk, w_proj, b_proj):
    B, T, E = x.shape
    H, _, Dh = wq.shape
    mask = jnp.tril(jnp.ones((T, T), dtype=bool))
    outs = []
    for h in range(H):
        q = x @ wq[h]
        k = x @ wk[h]
        v = k                                   # reference quirk: V = key(x)
        s = (q @ jnp.swapaxes(k, -1, -2)) / math.sqrt(Dh)
        s = jnp.where(mask, s, -jnp.inf)
        a = jax.nn.softmax(s, axis=-1)
        outs.append(a @ v)
    cat = jnp.concatenate(outs, axis=-1)
    return cat @ w_proj.T + b_proj


if __name__ == "__main__":
    # Small, module-consistent shapes.
    B, T, E, Dh, H = 2, 8, 32, 16, 4

    key = jax.random.PRNGKey(0)
    kx, kq, kk, kp, kb = jax.random.split(key, 5)

    x = jax.random.normal(kx, (B, T, E), dtype=jnp.float32)
    # Per-head query/key weights laid out as (E, Dh) so that Q = x @ W.
    wq = jax.random.normal(kq, (H, E, Dh), dtype=jnp.float32) * 0.1
    wk = jax.random.normal(kk, (H, E, Dh), dtype=jnp.float32) * 0.1
    # Projection Linear(H*Dh -> E): torch-style (out_features, in_features).
    w_proj = jax.random.normal(kp, (E, H * Dh), dtype=jnp.float32) * 0.1
    b_proj = jax.random.normal(kb, (E,), dtype=jnp.float32) * 0.1

    # One-time packing at init (outside jit), then the fused forward.
    packed = pack_params(wq, wk, w_proj, b_proj)
    out = mha_forward(x, *packed)
    out = jax.block_until_ready(out)

    ref = _reference(x, wq, wk, w_proj, b_proj)
    assert out.shape == (B, T, E)
    # Tolerance sized for bf16 MXU operands (f32 accumulation, f32 softmax).
    assert jnp.allclose(out, ref, atol=3e-2, rtol=3e-2), "mismatch vs reference"

    print("KERNEL_OK")
</pallas_src>

<mosaic_0001>
module attributes {stable_mosaic.version = 11 : i64} {
  func.func @_mha_kernel(%arg0: i32, %arg1: i32, %arg2: memref<8x32xf32, #tpu.memory_space<vmem>>, %arg3: memref<1x32x16xbf16, #tpu.memory_space<vmem>>, %arg4: memref<1x32x16xbf16, #tpu.memory_space<vmem>>, %arg5: memref<1x16x32xbf16, #tpu.memory_space<vmem>>, %arg6: memref<1x32xf32, #tpu.memory_space<vmem>>, %arg7: memref<8x32xf32, #tpu.memory_space<vmem>>) attributes {dimension_semantics = [#tpu.dimension_semantics<parallel>, #tpu.dimension_semantics<arbitrary>], iteration_bounds = array<i64: 2, 4>, scalar_prefetch = 0 : i64, scratch_operands = 0 : i64, tpu.core_type = #tpu.core_type<tc>, window_params = [{transform_indices = @transform_0, window_bounds = array<i64: 8, 32>}, {transform_indices = @transform_1, window_bounds = array<i64: 1, 32, 16>}, {transform_indices = @transform_2, window_bounds = array<i64: 1, 32, 16>}, {transform_indices = @transform_3, window_bounds = array<i64: 1, 16, 32>}, {pipeline_mode = #tpu.pipeline_mode<synchronous>, transform_indices = @transform_4, window_bounds = array<i64: 1, 32>}, {transform_indices = @transform_5, window_bounds = array<i64: 8, 32>}]} {
    %c0 = arith.constant 0 : index
    %c0_0 = arith.constant 0 : index
    %0 = vector.load %arg2[%c0, %c0_0] : memref<8x32xf32, #tpu.memory_space<vmem>>, vector<8x32xf32>
    %1 = arith.truncf %0 : vector<8x32xf32> to vector<8x32xbf16>
    %c0_1 = arith.constant 0 : index
    %c0_2 = arith.constant 0 : index
    %c0_3 = arith.constant 0 : index
    %2 = vector.load %arg3[%c0_1, %c0_2, %c0_3] : memref<1x32x16xbf16, #tpu.memory_space<vmem>>, vector<1x32x16xbf16>
    %3 = vector.shape_cast %2 : vector<1x32x16xbf16> to vector<32x16xbf16>
    %cst = arith.constant dense<0.000000e+00> : vector<8x16xf32>
    %4 = tpu.matmul %1, %3, %cst {dimension_numbers = #tpu.dot_dimension_numbers<[1], [0], [0], [1], [0, 0, 1, 1], [], []>} : vector<8x32xbf16>, vector<32x16xbf16>, vector<8x16xf32> -> vector<8x16xf32>
    %c0_4 = arith.constant 0 : index
    %c0_5 = arith.constant 0 : index
    %c0_6 = arith.constant 0 : index
    %5 = vector.load %arg4[%c0_4, %c0_5, %c0_6] : memref<1x32x16xbf16, #tpu.memory_space<vmem>>, vector<1x32x16xbf16>
    %6 = vector.shape_cast %5 : vector<1x32x16xbf16> to vector<32x16xbf16>
    %cst_7 = arith.constant dense<0.000000e+00> : vector<8x16xf32>
    %7 = tpu.matmul %1, %6, %cst_7 {dimension_numbers = #tpu.dot_dimension_numbers<[1], [0], [0], [1], [0, 0, 1, 1], [], []>} : vector<8x32xbf16>, vector<32x16xbf16>, vector<8x16xf32> -> vector<8x16xf32>
    %8 = arith.truncf %7 : vector<8x16xf32> to vector<8x16xbf16>
    %9 = arith.truncf %4 : vector<8x16xf32> to vector<8x16xbf16>
    %cst_8 = arith.constant dense<0.000000e+00> : vector<8x8xf32>
    %10 = tpu.matmul %9, %8, %cst_8 {dimension_numbers = #tpu.dot_dimension_numbers<[1], [1], [0], [0], [0, 0, 1, 0], [], []>} : vector<8x16xbf16>, vector<8x16xbf16>, vector<8x8xf32> -> vector<8x8xf32>
    %11 = tpu.iota {dimensions = array<i32: 0>} : vector<8x8xi32>
    %12 = tpu.iota {dimensions = array<i32: 1>} : vector<8x8xi32>
    %13 = arith.cmpi sle, %12, %11 : vector<8x8xi32>
    %cst_9 = arith.constant -1.000000e+30 : f32
    %14 = vector.broadcast %cst_9 : f32 to vector<8x8xf32>
    %15 = arith.select %13, %10, %14 : vector<8x8xi1>, vector<8x8xf32>
    %cst_10 = arith.constant dense<0xFF800000> : vector<8xf32>
    %16 = vector.multi_reduction <maximumf>, %15, %cst_10 [1] : vector<8x8xf32> to vector<8xf32>
    %17 = vector.shape_cast %16 : vector<8xf32> to vector<8x1xf32>
    %18 = vector.broadcast %17 : vector<8x1xf32> to vector<8x8xf32>
    %19 = arith.subf %15, %18 : vector<8x8xf32>
    %20 = math.exp %19 : vector<8x8xf32>
    %cst_11 = arith.constant dense<0.000000e+00> : vector<8xf32>
    %21 = vector.multi_reduction <add>, %20, %cst_11 [1] : vector<8x8xf32> to vector<8xf32>
    %22 = vector.shape_cast %21 : vector<8xf32> to vector<8x1xf32>
    %23 = vector.broadcast %22 : vector<8x1xf32> to vector<8x8xf32>
    %24 = arith.divf %20, %23 : vector<8x8xf32>
    %25 = arith.truncf %24 : vector<8x8xf32> to vector<8x8xbf16>
    %cst_12 = arith.constant dense<0.000000e+00> : vector<8x16xf32>
    %26 = tpu.matmul %25, %8, %cst_12 {dimension_numbers = #tpu.dot_dimension_numbers<[1], [0], [0], [1], [0, 0, 1, 1], [], []>} : vector<8x8xbf16>, vector<8x16xbf16>, vector<8x16xf32> -> vector<8x16xf32>
    %27 = arith.truncf %26 : vector<8x16xf32> to vector<8x16xbf16>
    %c0_13 = arith.constant 0 : index
    %c0_14 = arith.constant 0 : index
    %c0_15 = arith.constant 0 : index
    %28 = vector.load %arg5[%c0_13, %c0_14, %c0_15] : memref<1x16x32xbf16, #tpu.memory_space<vmem>>, vector<1x16x32xbf16>
    %29 = vector.shape_cast %28 : vector<1x16x32xbf16> to vector<16x32xbf16>
    %cst_16 = arith.constant dense<0.000000e+00> : vector<8x32xf32>
    %30 = tpu.matmul %27, %29, %cst_16 {dimension_numbers = #tpu.dot_dimension_numbers<[1], [0], [0], [1], [0, 0, 1, 1], [], []>} : vector<8x16xbf16>, vector<16x32xbf16>, vector<8x32xf32> -> vector<8x32xf32>
    %c0_i32 = arith.constant 0 : i32
    %31 = arith.cmpi eq, %arg1, %c0_i32 : i32
    %32 = arith.extui %31 : i1 to i32
    %c0_i32_17 = arith.constant 0 : i32
    %33 = arith.cmpi ne, %32, %c0_i32_17 : i32
    scf.if %33 {
      %c0_22 = arith.constant 0 : index
      %c0_23 = arith.constant 0 : index
      %37 = vector.load %arg6[%c0_22, %c0_23] : memref<1x32xf32, #tpu.memory_space<vmem>>, vector<1x32xf32>
      %38 = vector.shape_cast %37 : vector<1x32xf32> to vector<1x32xf32>
      %39 = vector.broadcast %38 : vector<1x32xf32> to vector<8x32xf32>
      %c0_24 = arith.constant 0 : index
      %c0_25 = arith.constant 0 : index
      %40 = vector.load %arg7[%c0_24, %c0_25] : memref<8x32xf32, #tpu.memory_space<vmem>>, vector<8x32xf32>
      tpu.vector_store %arg7[%c0_24, %c0_25], %39 {strides = array<i32>} : memref<8x32xf32, #tpu.memory_space<vmem>>, vector<8x32xf32>,
    } else {
    }
    %c0_18 = arith.constant 0 : index
    %c0_19 = arith.constant 0 : index
    %34 = vector.load %arg7[%c0_18, %c0_19] : memref<8x32xf32, #tpu.memory_space<vmem>>, vector<8x32xf32>
    %35 = arith.addf %34, %30 : vector<8x32xf32>
    %c0_20 = arith.constant 0 : index
    %c0_21 = arith.constant 0 : index
    %36 = vector.load %arg7[%c0_20, %c0_21] : memref<8x32xf32, #tpu.memory_space<vmem>>, vector<8x32xf32>
    tpu.vector_store %arg7[%c0_20, %c0_21], %35 {strides = array<i32>} : memref<8x32xf32, #tpu.memory_space<vmem>>, vector<8x32xf32>,
    return
  }
  func.func @transform_0(%arg0: i32, %arg1: i32) -> (i32, i32) {
    %c0_i32 = arith.constant 0 : i32
    %c0_i32_0 = arith.constant 0 : i32
    return %arg0, %c0_i32 : i32, i32
  }
  func.func @transform_1(%arg0: i32, %arg1: i32) -> (i32, i32, i32) {
    %c0_i32 = arith.constant 0 : i32
    %c0_i32_0 = arith.constant 0 : i32
    %c0_i32_1 = arith.constant 0 : i32
    return %arg1, %c0_i32, %c0_i32_0 : i32, i32, i32
  }
  func.func @transform_2(%arg0: i32, %arg1: i32) -> (i32, i32, i32) {
    %c0_i32 = arith.constant 0 : i32
    %c0_i32_0 = arith.constant 0 : i32
    %c0_i32_1 = arith.constant 0 : i32
    return %arg1, %c0_i32, %c0_i32_0 : i32, i32, i32
  }
  func.func @transform_3(%arg0: i32, %arg1: i32) -> (i32, i32, i32) {
    %c0_i32 = arith.constant 0 : i32
    %c0_i32_0 = arith.constant 0 : i32
    %c0_i32_1 = arith.constant 0 : i32
    return %arg1, %c0_i32, %c0_i32_0 : i32, i32, i32
  }
  func.func @transform_4(%arg0: i32, %arg1: i32) -> (i32, i32) {
    %c0_i32 = arith.constant 0 : i32
    %c0_i32_0 = arith.constant 0 : i32
    %c0_i32_1 = arith.constant 0 : i32
    return %c0_i32, %c0_i32_0 : i32, i32
  }
  func.func @transform_5(%arg0: i32, %arg1: i32) -> (i32, i32) {
    %c0_i32 = arith.constant 0 : i32
    %c0_i32_0 = arith.constant 0 : i32
    return %arg0, %c0_i32 : i32, i32
  }
}

</mosaic_0001>

<bundles_post_ra>
// kernel: mha_forward.1
= control target key start
LH: loop header
LB: loop body
LE: loop exit
PB: predicated region body
PF: predicated region fallthrough
CT: control target
= control target key end

     0   :  { %10 = vsyncpa [#allocation3], 0  ;;  %s1165_s0 = inlined_call_operand.vmem [shape: f32[16,32], index: 0, kind: input, shape index: {}]   ;;  %s1166_s1 = inlined_call_operand.vmem [shape: bf16[4,32,16], index: 1, kind: input, shape index: {}]   ;;  %s1167_s2 = inlined_call_operand.vmem [shape: bf16[4,32,16], index: 2, kind: input, shape index: {}]   ;;  %s1168_s3 = inlined_call_operand.vmem [shape: bf16[4,16,32], index: 3, kind: input, shape index: {}]   ;;  %s1169_s4 = inlined_call_operand.vmem [shape: f32[1,32], index: 4, kind: input, shape index: {}]   ;;  %s1170_s5 = inlined_call_operand.hbm [shape: f32[16,32], index: 5, kind: output, shape index: {}]  }
   0x1   :  { %12 = vsyncpa [#allocation3 + $0x1], 0  ;;  %s999_s18 = smov 0   ;;  %s1001_s19 = smov 0  }
   0x2   :  { %s1003_s20 = smov 0   ;;  %s1005_s21 = smov 0  }
   0x3   :  { %s1007_s22 = smov 0   ;;  %s1009_s23 = smov 0  }
   0x4   :  { %s1011_s24 = smov 0   ;;  %s1013_s25 = smov 0  }
   0x5 LB: > { %s712_s26 = sadd.s32 4294967295, %s964_s25   ;;  %s713_s27 = sadd.s32 4294967294, %s964_s25   ;;  %s964_s25 = sphi %s1013_s25, %s18_s25   ;;  %s960_s24 = sphi %s1011_s24, %s1186_s24   ;;  %s956_s23 = sphi %s1009_s23, %s1185_s23   ;;  %s952_s22 = sphi %s1007_s22, %s1184_s22   ;;  %s948_s21 = sphi %s1005_s21, %s1183_s21   ;;  %s944_s20 = sphi %s1003_s20, %s1182_s20   ;;  %s940_s19 = sphi %s1001_s19, %s1181_s19   ;;  %s936_s18 = sphi %s999_s18, %s1180_s18  }
   0x6   : > { %s27_s28 = sadd.s32 1, %s956_s23  ;;  %s30_s29 = sadd.s32 1, %s960_s24 }
   0x7   : > { %p28_p0 = scmp.ge.s32.totalorder %s27_s28, 4  ;;  %p172_p1 = scmp.ne.s32.totalorder %s944_s20, %s940_s19 }
   0x8   : > { %p173_p2 = scmp.eq.s32.totalorder %s712_s26, 7  ;;  %p178_p4 = scmp.ne.s32.totalorder %s940_s19, %s936_s18 }
   0x9   : > { %s1188_s28 = smov (%p28_p0, %s27_s28), 0  ;;  %s1190_s29 = smov (!%p28_p0, %s30_s29), %s960_s24 }
   0xa   : > { %1173 = sst [smem:[#allocation5_spill]] %s1188_s28  ;;  %p1048_p3 = por %p173_p2, %p172_p1 }
   0xb   : > { %p32_p5 = scmp.ge.s32.totalorder %s1190_s29, 2  ;;  %p179_p6 = scmp.eq.s32.totalorder %s713_s27, 7 }
   0xc   : > { %p716_p7 = scmp.ge.s32.totalorder %s964_s25, 1  ;;  %p231_p8 = scmp.lt.s32.totalorder %s964_s25, 9 }
   0xd   : > { %s1192_s29 = smov (%p32_p5, %s1190_s29), 0  ;;  %p1058_p9 = por %p179_p6, %p178_p4 }
   0xe   : > { %1175 = sst [smem:[#allocation6_spill]] %s1192_s29  ;;  %p232_p10 = pnand %p716_p7, %p231_p8 }
   0xf   : > { %s159_s7 = ssub.s32 %s960_s24, %s1192_s29  ;;  %s162_s8 = sadd.s32 1, %s944_s20 }
  0x10   : > { %p160_p11 = scmp.eq.s32.totalorder %s159_s7, 0  ;;  %235 = sbr.rel (%p232_p10) target bundleno = 1164 (0x48c), region = 40 }
  0x11   : > { %p277_p12 = scmp.lt.s32.totalorder (!%p232_p10), %s948_s21, 3  ;;  %s1171_s10 = sand.u32 (!%p232_p10), 1, %s940_s19  }
  0x12   : > { %s1066_s9 = scalar_select %p160_p11, %s944_s20, %s162_s8  }
  0x13   : > { %s1072_s11 = sshll.u32 (!%p232_p10), %s1171_s10, 3  ;;  %p273_p13 = scmp.lt.s32.totalorder (!%p232_p10), %s952_s22, 1 }
  0x14   : > { %p735_p0 = scmp.ne.s32.totalorder (!%p232_p10), %s948_s21, 0 }
  0x15   : > { %v966_v0 = vmov 0.0   ;;  %s1076_s12 = scalar_select %p277_p12, %s948_s21, 3  ;;  %vm967_vm0 = vmmov 0   ;;  %vm311_vm1 = vcmask 261120   ;;  %vm413_vm2 = vcmask 130048  }
  0x16   : > { %764 = vmatprep.subr.bf16.mxu1 %v966_v0  ;;  %756 = vmatprep.subr.bf16.mxu0 %v966_v0  ;;  %s274_s7 = scalar_select %p273_p13, %s952_s22, 1  ;;  %vm482_vm3 = vcmask 1043456   ;;  %v460_v19 = vlaneseq  ;;  %vm466_vm5 = vcmask 64512  }
  0x17   : > { %768 = vmatprep.mubr.msk.bf16.mxu1 %vm967_vm0, %v966_v0  ;;  %760 = vmatprep.mubr.msk.bf16.mxu0 %vm967_vm0, %v966_v0  ;;  %s741_s13 = sshll.u32 %s1076_s12, 4 }
  0x18   : > { %s286_s16 = scalar_lea.vmem %s1167_s2, %s741_s13  ;;  %s281_s27 = scalar_lea.vmem %s1166_s1, %s741_s13  ;;  %v461_v20 = vshrl.u32 %v460_v19, 7  ;;  %v463_v21 = vand.u32 127, %v460_v19 }
  0x19   : > { %v863_v1 = vld [vmem:[%s286_s16 + $0x8] sm:$0xff]   ;;  %v865_v3 = vld [vmem:[%s286_s16] sm:$0xff]   ;;  %s718_s8 = sshll.u32 %s274_s7, 3 }
  0x1a   : > { %v864_v2 = vld [vmem:[%s281_s27 + $0x8] sm:$0xff]   ;;  %765 = vmatpush3.bf16.msra.mxu1 %v863_v1  ;;  %v866_v4 = vld [vmem:[%s281_s27] sm:$0xff]   ;;  %s276_s28 = scalar_lea.vmem %s1165_s0, %s718_s8  ;;  %vm464_vm4 = vcmp.le.s32.totalorder %v463_v21, %v461_v20 }
  0x1b   : > { %757 = vmatpush3.bf16.msra.mxu0 %v864_v2  ;;  %766 = vmatprep.subr.bf16.mxu1 %v966_v0  ;;  %v293_v5 = vld [vmem:[%s276_s28] sm:$0xff]  ;;  %s743_s28 = sshll.u32 %s1076_s12, 3  ;;  %s272_s12 = scalar_lea.vmem [#allocation2], %s1072_s11 }
  0x1c   : > { %758 = vmatprep.subr.bf16.mxu0 %v966_v0  ;;  %v294_v6 = vpack.c.bf16 %v293_v5, %v293_v5  ;;  %s291_s13 = scalar_lea.vmem %s1168_s3, %s743_s28 }
  0x1d   : > { %v867_v33 = vld [vmem:[%s291_s13] sm:$0xff]  }
  0x1e   : > { %767 = vmatpush3.bf16.msra.mxu1 %v865_v3 }
  0x1f   : > { %759 = vmatpush3.bf16.msra.mxu0 %v866_v4  ;;  %778 = vmatprep.subr.bf16.mxu1 %v966_v0 }
  0x20   : > { %772 = vmatprep.subr.bf16.mxu0 %v966_v0 }
  0x21   : > { %769 = vmatmul.mubr.msk.bf16.vlgmr.msra.gmra.mxu1 %vm311_vm1, %v294_v6 }
  0x22   : > { %761 = vmatmul.mubr.msk.bf16.vlgmr.msra.gmra.mxu0 %vm311_vm1, %v294_v6  ;;  %780 = vmatprep.mubr.msk.bf16.mxu1 %vm967_vm0, %v966_v0 }
  0x23   : > { %774 = vmatprep.mubr.msk.bf16.mxu0 %vm967_vm0, %v966_v0 }
  0xe1   : > { %v405_v7 = vpop.f32.mrf.mxu1 }
  0xe2   : > { %v411_v8 = vpack.c.bf16 %v405_v7, %v405_v7  ;;  %v349_v9 = vpop.f32.mrf.mxu0 }
  0xe3   : > { %v770_v10 = vpop.f32.mrf.mxu1  ;;  %v412_v17 = vpack.c.bf16 %v349_v9, %v349_v9 }
  0xe4   : > { %v418_v11 = vsel %vm413_vm2, %v411_v8, 0  ;;  %v483_v12 = vsel %vm482_vm3, %v411_v8, 0  ;;  %v762_v13 = vpop.f32.mrf.mxu0 }
  0xe5   : > { %v408_v14 = vpop.f32.mrf.mxu1  ;;  %773 = vmatpush3.bf16.xpose.msra.mxu0 %v418_v11  ;;  %779 = vmatpush3.bf16.msra.mxu1 %v483_v12 }
  0xe6   : > { %v352_v15 = vpop.f32.mrf.mxu0  ;;  %784 = vmatprep.subr.bf16.mxu0 %v966_v0 }
  0xe7   : > { %v771_v16 = vpop.f32.mrf.mxu1 }
  0xe8   : > { %v763_v18 = vpop.f32.mrf.mxu0 }
  0xec   : > { %775 = vmatmul.mubr.msk.bf16.vlgmr.msra.gmra.mxu0 %vm413_vm2, %v412_v17 }
  0xed   : > { %786 = vmatprep.mubr.msk.bf16.mxu0 %vm967_vm0, %v966_v0  ;;  %785 = vmatpush3.bf16.msra.mxu0 %v867_v33 }
 0x1ac   : > { %v454_v22 = vpop.f32.mrf.mxu0 }
 0x1ad   : > { %v465_v23 = vsel %vm464_vm4, %v454_v22, -1e+30 }
 0x1ae   : > { %v776_v24 = vpop.f32.mrf.mxu0  ;;  %v467_v25 = vsel %vm466_vm5, %v465_v23, -inf }
 0x1af   : > { %468 = vmax.xlane.f32.xlu0 %v467_v25 }
 0x1b0   : > { %v457_v26 = vpop.f32.mrf.mxu0 }
 0x1b2   : > { %v777_v27 = vpop.f32.mrf.mxu0 }
 0x238   : > { %v469_v28 = vpop.xlane.xlu0 %468 }
 0x239   : > { %v470_v29 = vsub.f32 %v465_v23, %v469_v28 }
 0x23b   : > { %v471_v30 = vmul.f32 1.442695, %v470_v29 }
 0x23d   : > { %868 = vpow2.f32 %v471_v30 }
 0x24a   : > { %v869_v31 = vpop.eup %868 }
 0x24b   : > { %v473_v32 = vsel %vm466_vm5, %v869_v31, 0.0 }
 0x24c   : > { %474 = vadd.xlane.f32.xlu0 %v473_v32 }
 0x2d5   : > { %v475_v34 = vpop.xlane.xlu0 %474 }
 0x2d6   : > { %870 = vrcp.f32 %v475_v34 }
 0x2e3   : > { %v871_v35 = vpop.eup %870 }
 0x2e4   : > { %v477_v36 = vmul.f32 %v871_v35, %v869_v31 }
 0x2e6   : > { %v478_v37 = vpack.c.bf16 %v477_v36, %v477_v36 }
 0x2e8   : > { %781 = vmatmul.mubr.msk.bf16.vlgmr.msra.gmra.mxu1 %vm466_vm5, %v478_v37 }
 0x3a8   : > { %v519_v38 = vpop.f32.mrf.mxu1 }
 0x3a9   : > { %v525_v39 = vpack.c.bf16 %v519_v38, %v519_v38 }
 0x3aa   : > { %v782_v40 = vpop.f32.mrf.mxu1 }
 0x3ab   : > { %787 = vmatmul.mubr.msk.bf16.vlgmr.msra.gmra.mxu0 %vm413_vm2, %v525_v39 }
 0x3ac   : > { %v522_v41 = vpop.f32.mrf.mxu1 }
 0x3ae   : > { %v783_v42 = vpop.f32.mrf.mxu1 }
 0x46b   : > { %v571_v43 = vpop.f32.mrf.mxu0 }
 0x46d   : > { %v788_v44 = vpop.f32.mrf.mxu0  ;;  %580 = sbr.rel (%p735_p0) target bundleno = 1140 (0x474), region = 44 }
 0x46f   : > { %v574_v45 = vpop.f32.mrf.mxu0 }
 0x471   : > { %v789_v46 = vpop.f32.mrf.mxu0 }
 0x472   : > { %v736_v47 = vld [vmem:[%s1169_s4] ss:$0 sm:$0xff] }
 0x473   : > { %588 = vst.msk [vmem:[%s272_s12] sm:$0xff] %vm311_vm1, %v736_v47 }
 0x474 PF: > { %s738_s16 = sshll.u32 %s952_s22, 7  ;;  %s606_s21 = sshll.u32 %s272_s12, 4  ;;  %s607_s21 = int_to_ptr.vmem [resolvable:$true] %s606_s21 }
 0x475   : > { %s1116_s11 = scalar_lea.hbm %s1170_s5, %s738_s16  ;;  %s1177_s27 = sand.u32 1, %s940_s19  }
 0x476   : > { %s593_s7 = scalar_lea.sflag [#allocation3], %s1177_s27  ;;  %s872_s8 = scalar_lea.vmem %s607_s21, 128 }
 0x477   : > { %p873_p1 = scmp.ne.s32.totalorder %s607_s21, %s872_s8  ;;  %s968_s28 = smov [#allocation2]  }
 0x478   : > { %s876_s29 = sshll.u32 %s968_s28, 4  ;;  %s877_s29 = int_to_ptr.vmem [resolvable:$false] %s876_s29 }
 0x479   : > { %p874_p2 = pnand %p873_p1, %p1048_p3  ;;  %s878_s22 = scalar_lea.vmem %s877_s29, 256 }
 0x47a   : > { %v589_v48 = vld [vmem:[%s272_s12] sm:$0xff]  ;;  %p879_p5 = scmp.lt.s32.totalorder %s607_s21, %s877_s29  ;;  %p880_p6 = scmp.lt.s32.totalorder %s878_s22, %s872_s8 }
 0x47b   : > { %v590_v49 = vadd.f32 %v589_v48, %v571_v43  ;;  %p875_p4 = pneg %p874_p2 }
 0x47c   : > { %p881_p7 = por %p880_p6, %p879_p5 }
 0x47d   : > { %591 = vst.msk [vmem:[%s272_s12] sm:$0xff] %vm311_vm1, %v590_v49 }
 0x47e   : > { %p882_p8 = pnand %p881_p7, %p875_p4 }
 0x480   : > { %885 = shalt.err (!%p882_p8)
}
 0x481   : > { %s886_s10 = scalar_lea.hbm %s1116_s11, 128  ;;  %s890_s14 = scalar_lea.hbm %s1170_s5, 256 }
 0x482   : > { %p887_p10 = scmp.ne.s32.totalorder %s1116_s11, %s886_s10  ;;  %p891_p13 = scmp.lt.s32.totalorder %s1116_s11, %s1170_s5 }
 0x483   : > { %p892_p0 = scmp.lt.s32.totalorder %s890_s14, %s886_s10 }
 0x484   : > { %p888_p11 = pnand %p887_p10, %p1048_p3 }
 0x485   : > { %p893_p1 = por %p892_p0, %p891_p13 }
 0x486   : > { %p889_p12 = pneg %p888_p11 }
 0x488   : > { %p894_p2 = pnand %p893_p1, %p889_p12 }
 0x48a   : > { %897 = shalt.err (!%p894_p2)
}
 0x48b   : > { %790 = dma.vmem_to_hbm [thread:$0]  (%p1048_p3), %s607_s21, 128, %s1116_s11, %s593_s7  }
 0x48c PF: > { %p796_p4 = scmp.ge.s32.totalorder %s964_s25, 2  ;;  %s618_s17 = sand.u32 1, %s936_s18  }
 0x48d   : > { %s619_s26 = scalar_lea.sflag [#allocation3], %s618_s17 }
 0x48e   : > { %p793_p5 = pnand %p796_p4, %p1058_p9 }
 0x490   : > { %p794_p6 = pneg %p793_p5 }
 0x492   : > { %931 = dma.done.wait (%p794_p6), %s619_s26, 128  }
 0x493   : > { %933 = vsyncadd (%p794_p6), %s619_s26, 4294967168  ;;  %s18_s25 = sadd.s32 1, %s964_s25   ;;  %s1178_s30 = sld [smem:[#allocation5_spill]] }
 0x494   : > { %p15_p7 = scmp.ge.s32.totalorder %s18_s25, 10   ;;  %s1179_s11 = sld [smem:[#allocation6_spill]] }
 0x495   : > { %s1180_s18 = smov %s940_s19  ;;  %s1181_s19 = smov %s944_s20 }
 0x496   : > { %s1182_s20 = smov %s1066_s9  ;;  %s1183_s21 = smov %s956_s23 }
 0x497   : > { %s1184_s22 = smov %s960_s24  ;;  %17 = sbr.rel (!%p15_p7) target bundleno = 5 (0x5), region = 88 }
 0x499   : > { %s1185_s23 = smov %s1178_s30 }
 0x49a   : > { %s1186_s24 = smov %s1179_s11 }
 0x49c   :  { %624 = vsyncpa [#allocation3], 1 }
 0x49d   :  { %626 = vsyncpa [#allocation3 + $0x1], 1 }

</bundles_post_ra>
